<compile_context>
chip_gen: v7x
topology: tpu7x:2x2x1
jax: 0.10.0
libtpu: 0.0.40
codegen_flags: <defaults>
</compile_context>

<pallas_src>
import functools
import math

import jax
import jax.numpy as jnp
import numpy as np
from jax.experimental import pallas as pl
from jax.experimental.pallas import tpu as pltpu


# ----------------------------------------------------------------------------
# Pallas kernel: fully fused masked MLP forward
#   y = relu(x @ mask(W1) + mask(b1)) @ mask(W2) + mask(b2)
# with W/b fused into one augmented operand per layer.
# ----------------------------------------------------------------------------
def fused_mask_mlp_kernel(thr_ref, x_ref, w1_ref, s1_ref, w2_ref, s2_ref, o_ref,
                          *, d_in, h_pad):
    # thr_ref : (1, 1) f32 in SMEM   -- global subnet threshold
    # x_ref   : (B, Din)
    # w1_ref  : (Din+1, Hpad)  rows 0..Din-1 = W1^T, row Din = b1, cols >= Dhid are 0
    # s1_ref  : (Din+1, Hpad)  matching scores; padded cols are -inf
    # w2_ref  : (Hpad+1, Dpad) rows 0..Dhid-1 = W2^T, row Hpad = b2, rest 0
    # s2_ref  : (Hpad+1, Dpad) matching scores; padded entries are -inf
    # o_ref   : (B, Dpad)      lane-dense output (sliced to Dout in the wrapper)
    thr = thr_ref[0, 0]

    # --- layer 1: masked linear (+ fused bias row) + ReLU ---------------------
    w1m = jnp.where(s1_ref[...] >= thr, w1_ref[...], 0.0)            # (Din+1, Hpad)
    h = jnp.dot(x_ref[...], w1m[:d_in, :],
                preferred_element_type=jnp.float32) + w1m[d_in:d_in + 1, :]
    h = jnp.maximum(h, 0.0)                                           # (B, Hpad), lane-dense

    # --- layer 2: masked linear (+ fused bias row) -----------------------------
    w2m = jnp.where(s2_ref[...] >= thr, w2_ref[...], 0.0)            # (Hpad+1, Dpad)
    y = jnp.dot(h, w2m[:h_pad, :],
                preferred_element_type=jnp.float32) + w2m[h_pad:h_pad + 1, :]

    o_ref[...] = y.astype(o_ref.dtype)


# ----------------------------------------------------------------------------
# One-time preparation: transpose, fold biases in, lane-pad, flatten scores.
# (Hoisted out of the forward path -- the review's biggest item.)
# ----------------------------------------------------------------------------
def prepare_mask_mlp(params, scores, *, h_pad=128, dout_pad=128):
    d_hid, d_in = params["w1"].shape
    d_out = params["w2"].shape[0]
    NEG = -jnp.inf

    # Layer 1 augmented tensors: (Din+1, Hpad).
    w1_aug = jnp.zeros((d_in + 1, h_pad), jnp.float32)
    w1_aug = w1_aug.at[:d_in, :d_hid].set(params["w1"].T)
    w1_aug = w1_aug.at[d_in, :d_hid].set(params["b1"])
    s1_aug = jnp.full((d_in + 1, h_pad), NEG, jnp.float32)
    s1_aug = s1_aug.at[:d_in, :d_hid].set(scores["w1"].T)
    s1_aug = s1_aug.at[d_in, :d_hid].set(scores["b1"])

    # Layer 2 augmented tensors: (Hpad+1, Dpad).
    w2_aug = jnp.zeros((h_pad + 1, dout_pad), jnp.float32)
    w2_aug = w2_aug.at[:d_hid, :d_out].set(params["w2"].T)
    w2_aug = w2_aug.at[h_pad, :d_out].set(params["b2"])
    s2_aug = jnp.full((h_pad + 1, dout_pad), NEG, jnp.float32)
    s2_aug = s2_aug.at[:d_hid, :d_out].set(scores["w2"].T)
    s2_aug = s2_aug.at[h_pad, :d_out].set(scores["b2"])

    # Flat concatenation of the REAL scores only (for the global threshold).
    all_scores = jnp.concatenate([s.reshape(-1) for s in scores.values()])

    return {
        "w1_aug": w1_aug, "s1_aug": s1_aug,
        "w2_aug": w2_aug, "s2_aug": s2_aug,
        "all_scores": all_scores,
        "dims": (d_in, d_hid, d_out, h_pad, dout_pad),
    }


# ----------------------------------------------------------------------------
# Global threshold (top-k instead of a full sort / partition).
# ----------------------------------------------------------------------------
def global_threshold(all_scores, sparsity):
    # k-th value over ALL scores concatenated (keep top `sparsity` fraction).
    # TODO(synk): PyTorch GetSubnet_global zeroes by sorted index; with exact
    # ties at the threshold the >=-threshold convention here can keep a few
    # extra elements (the JAX reference below shares the same convention).
    n = all_scores.shape[0]
    j = int((1.0 - sparsity) * n)
    j = min(max(j, 0), n - 1)          # clamp (handles sparsity == 0 edge case)
    k = n - j                          # static Python int >= 1
    return jax.lax.top_k(all_scores, k)[0][k - 1]


# ----------------------------------------------------------------------------
# Forward: one jitted executable = top_k + single fused pallas_call + slice.
# ----------------------------------------------------------------------------
@functools.partial(jax.jit, static_argnames=("sparsity", "dims"))
def _mask_forward_impl(x, w1_aug, s1_aug, w2_aug, s2_aug, all_scores,
                       *, sparsity, dims):
    d_in, d_hid, d_out, h_pad, dout_pad = dims
    thr = global_threshold(all_scores, sparsity)

    B = x.shape[0]
    vmem = pl.BlockSpec(memory_space=pltpu.MemorySpace.VMEM)
    smem = pl.BlockSpec(memory_space=pltpu.MemorySpace.SMEM)

    out_padded = pl.pallas_call(
        functools.partial(fused_mask_mlp_kernel, d_in=d_in, h_pad=h_pad),
        out_shape=jax.ShapeDtypeStruct((B, dout_pad), x.dtype),
        in_specs=[smem, vmem, vmem, vmem, vmem, vmem],
        out_specs=vmem,
    )(thr.reshape(1, 1).astype(jnp.float32), x, w1_aug, s1_aug, w2_aug, s2_aug)

    # Slice padding off in the wrapper (free layout plumbing).
    return out_padded[:, :d_out]


def mask_forward(x, prep, sparsity=0.5):
    return _mask_forward_impl(
        x, prep["w1_aug"], prep["s1_aug"], prep["w2_aug"], prep["s2_aug"],
        prep["all_scores"], sparsity=float(sparsity), dims=prep["dims"])


# ----------------------------------------------------------------------------
# Parameter / score initialization (deterministic, mirrors the PyTorch inits)
# ----------------------------------------------------------------------------
def kaiming_uniform(key, shape, a=math.sqrt(5)):
    # nn.init.kaiming_uniform_(t, a=sqrt(5)) : bound = gain * sqrt(3 / fan_in)
    fan_in = shape[1]
    gain = math.sqrt(2.0 / (1.0 + a * a))
    bound = gain * math.sqrt(3.0 / fan_in)
    return jax.random.uniform(key, shape, jnp.float32, -bound, bound)


def linear_bias_init(key, fan_in, dout):
    bound = 1.0 / math.sqrt(fan_in)
    return jax.random.uniform(key, (dout,), jnp.float32, -bound, bound)


def build_params(key, d_in, d_hidden, d_out):
    ks = jax.random.split(key, 8)
    params = {
        "w1": kaiming_uniform(ks[0], (d_hidden, d_in)),
        "b1": linear_bias_init(ks[1], d_in, d_hidden),
        "w2": kaiming_uniform(ks[2], (d_out, d_hidden)),
        "b2": linear_bias_init(ks[3], d_hidden, d_out),
    }
    # Mask.__init__ scores: kaiming_uniform(a=sqrt(5)) for weights, N(0, 0.01) for biases
    scores = {
        "w1": kaiming_uniform(ks[4], (d_hidden, d_in)),
        "b1": 0.01 * jax.random.normal(ks[5], (d_hidden,), jnp.float32),
        "w2": kaiming_uniform(ks[6], (d_out, d_hidden)),
        "b2": 0.01 * jax.random.normal(ks[7], (d_out,), jnp.float32),
    }
    return params, scores


# ----------------------------------------------------------------------------
# Pure-JAX reference (for correctness check)
# ----------------------------------------------------------------------------
def mask_forward_ref(x, params, scores, sparsity=0.5):
    all_s = jnp.concatenate([s.reshape(-1) for s in scores.values()])
    thr = global_threshold(all_s, sparsity)

    def mlin(x, w, sw, b, sb):
        wm = jnp.where(sw >= thr, w, 0.0)
        bm = jnp.where(sb >= thr, b, 0.0)
        return x @ wm.T + bm

    h = jnp.maximum(mlin(x, params["w1"], scores["w1"], params["b1"], scores["b1"]), 0.0)
    return mlin(h, params["w2"], scores["w2"], params["b2"], scores["b2"])


# ----------------------------------------------------------------------------
if __name__ == "__main__":
    d_in, d_hidden, d_out, batch = 16, 32, 8, 8
    sparsity = 0.5

    key = jax.random.PRNGKey(0)
    k_x, k_p = jax.random.split(key)
    x = jax.random.normal(k_x, (batch, d_in), jnp.float32)
    params, scores = build_params(k_p, d_in, d_hidden, d_out)

    # One-time layout plumbing (hoisted out of the forward path).
    prep = prepare_mask_mlp(params, scores)

    out = jax.block_until_ready(mask_forward(x, prep, sparsity))
    ref = jax.block_until_ready(mask_forward_ref(x, params, scores, sparsity))

    np.testing.assert_allclose(np.asarray(out), np.asarray(ref), rtol=1e-5, atol=1e-5)
    assert out.shape == (batch, d_out)
    print("KERNEL_OK")
</pallas_src>

<mosaic_0001>
module attributes {stable_mosaic.version = 11 : i64} {
  func.func @fused_mask_mlp_kernel(%arg0: memref<1x1xf32, #tpu.memory_space<smem>>, %arg1: memref<8x16xf32, #tpu.memory_space<vmem>>, %arg2: memref<17x128xf32, #tpu.memory_space<vmem>>, %arg3: memref<17x128xf32, #tpu.memory_space<vmem>>, %arg4: memref<129x128xf32, #tpu.memory_space<vmem>>, %arg5: memref<129x128xf32, #tpu.memory_space<vmem>>, %arg6: memref<8x128xf32, #tpu.memory_space<vmem>>) attributes {dimension_semantics = [], scalar_prefetch = 0 : i64, scratch_operands = 0 : i64, tpu.core_type = #tpu.core_type<tc>} {
    %c0 = arith.constant 0 : index
    %c0_0 = arith.constant 0 : index
    %0 = memref.load %arg0[%c0, %c0_0] : memref<1x1xf32, #tpu.memory_space<smem>>
    %c0_1 = arith.constant 0 : index
    %c0_2 = arith.constant 0 : index
    %1 = vector.load %arg3[%c0_1, %c0_2] : memref<17x128xf32, #tpu.memory_space<vmem>>, vector<17x128xf32>
    %2 = vector.broadcast %0 : f32 to vector<17x128xf32>
    %3 = arith.cmpf oge, %1, %2 : vector<17x128xf32>
    %c0_3 = arith.constant 0 : index
    %c0_4 = arith.constant 0 : index
    %4 = vector.load %arg2[%c0_3, %c0_4] : memref<17x128xf32, #tpu.memory_space<vmem>>, vector<17x128xf32>
    %cst = arith.constant 0.000000e+00 : f32
    %5 = vector.broadcast %cst : f32 to vector<17x128xf32>
    %6 = arith.select %3, %4, %5 : vector<17x128xi1>, vector<17x128xf32>
    %c0_5 = arith.constant 0 : index
    %c0_6 = arith.constant 0 : index
    %7 = vector.load %arg1[%c0_5, %c0_6] : memref<8x16xf32, #tpu.memory_space<vmem>>, vector<8x16xf32>
    %8 = vector.extract_strided_slice %6 {offsets = [0, 0], sizes = [16, 128], strides = [1, 1]} : vector<17x128xf32> to vector<16x128xf32>
    %cst_7 = arith.constant dense<0.000000e+00> : vector<8x128xf32>
    %9 = tpu.matmul %7, %8, %cst_7 {dimension_numbers = #tpu.dot_dimension_numbers<[1], [0], [0], [1], [0, 0, 1, 1], [], []>} : vector<8x16xf32>, vector<16x128xf32>, vector<8x128xf32> -> vector<8x128xf32>
    %10 = vector.extract_strided_slice %6 {offsets = [16, 0], sizes = [1, 128], strides = [1, 1]} : vector<17x128xf32> to vector<1x128xf32>
    %11 = vector.broadcast %10 : vector<1x128xf32> to vector<8x128xf32>
    %12 = arith.addf %9, %11 : vector<8x128xf32>
    %cst_8 = arith.constant 0.000000e+00 : f32
    %13 = vector.broadcast %cst_8 : f32 to vector<8x128xf32>
    %14 = arith.maximumf %12, %13 : vector<8x128xf32>
    %c0_9 = arith.constant 0 : index
    %c0_10 = arith.constant 0 : index
    %15 = vector.load %arg5[%c0_9, %c0_10] : memref<129x128xf32, #tpu.memory_space<vmem>>, vector<129x128xf32>
    %16 = vector.broadcast %0 : f32 to vector<129x128xf32>
    %17 = arith.cmpf oge, %15, %16 : vector<129x128xf32>
    %c0_11 = arith.constant 0 : index
    %c0_12 = arith.constant 0 : index
    %18 = vector.load %arg4[%c0_11, %c0_12] : memref<129x128xf32, #tpu.memory_space<vmem>>, vector<129x128xf32>
    %cst_13 = arith.constant 0.000000e+00 : f32
    %19 = vector.broadcast %cst_13 : f32 to vector<129x128xf32>
    %20 = arith.select %17, %18, %19 : vector<129x128xi1>, vector<129x128xf32>
    %21 = vector.extract_strided_slice %20 {offsets = [0, 0], sizes = [128, 128], strides = [1, 1]} : vector<129x128xf32> to vector<128x128xf32>
    %cst_14 = arith.constant dense<0.000000e+00> : vector<8x128xf32>
    %22 = tpu.matmul %14, %21, %cst_14 {dimension_numbers = #tpu.dot_dimension_numbers<[1], [0], [0], [1], [0, 0, 1, 1], [], []>} : vector<8x128xf32>, vector<128x128xf32>, vector<8x128xf32> -> vector<8x128xf32>
    %23 = vector.extract_strided_slice %20 {offsets = [128, 0], sizes = [1, 128], strides = [1, 1]} : vector<129x128xf32> to vector<1x128xf32>
    %24 = vector.broadcast %23 : vector<1x128xf32> to vector<8x128xf32>
    %25 = arith.addf %22, %24 : vector<8x128xf32>
    %c0_15 = arith.constant 0 : index
    %c0_16 = arith.constant 0 : index
    %26 = vector.load %arg6[%c0_15, %c0_16] : memref<8x128xf32, #tpu.memory_space<vmem>>, vector<8x128xf32>
    tpu.vector_store %arg6[%c0_15, %c0_16], %25 {strides = array<i32>} : memref<8x128xf32, #tpu.memory_space<vmem>>, vector<8x128xf32>,
    return
  }
}

</mosaic_0001>

<bundles_post_ra>
// kernel: _mask_forward_impl.1
= control target key start
LH: loop header
LB: loop body
LE: loop exit
PB: predicated region body
PF: predicated region fallthrough
CT: control target
= control target key end

     0   :  { %12 = vsyncpa [#allocation4], 0  ;;  %s693_s0 = inlined_call_operand.<no memory space> [shape: f32[1,1], index: 0, kind: input, shape index: {}]   ;;  %s694_s1 = inlined_call_operand.vmem [shape: f32[8,16], index: 1, kind: input, shape index: {}]   ;;  %s695_s2 = inlined_call_operand.vmem [shape: f32[17,128], index: 2, kind: input, shape index: {}]   ;;  %s696_s3 = inlined_call_operand.hbm [shape: f32[17,128], index: 3, kind: input, shape index: {}]   ;;  %s697_s4 = inlined_call_operand.hbm [shape: f32[129,128], index: 4, kind: input, shape index: {}]   ;;  %s698_s5 = inlined_call_operand.hbm [shape: f32[129,128], index: 5, kind: input, shape index: {}]   ;;  %s699_s6 = inlined_call_operand.hbm [shape: f32[8,128], index: 6, kind: output, shape index: {}]  }
   0x1   :  { %13 = vsyncpa [#allocation7], 0 }
   0x2   :  { %14 = vsyncpa [#allocation5], 0  ;;  %s539_s21 = smov [#allocation6]   ;;  %s540_s23 = smov [#allocation3]  }
   0x3   :  { %s38_s22 = sshll.u32 %s539_s21, 4  ;;  %s26_s24 = sshll.u32 %s540_s23, 4  ;;  %s39_s22 = int_to_ptr.vmem [resolvable:$true] %s38_s22  ;;  %s583_s24 = int_to_ptr.vmem [resolvable:$true] %s26_s24 }
   0x4   :  { %s445_s27 = scalar_lea.hbm %s697_s4, 2176 }
   0x5   :  { %p446_p0 = scmp.ne.s32.totalorder %s697_s4, %s445_s27  ;;  %p449_p1 = scmp.lt.u32.totalorder %s445_s27, %s697_s4 }
   0x7   :  { %p451_p2 = pnand %p449_p1, %p446_p0 }
   0x9   :  { %454 = shalt.err (!%p451_p2)
}
   0xa   :  { %s455_s8 = scalar_lea.vmem %s39_s22, 2176  ;;  %p460_p4 = scmp.lt.s32.totalorder %s39_s22, %s39_s22 }
   0xb   :  { %p456_p3 = scmp.ne.s32.totalorder %s39_s22, %s455_s8  ;;  %p461_p5 = scmp.lt.s32.totalorder %s455_s8, %s455_s8 }
   0xd   :  { %p462_p6 = por %p461_p5, %p460_p4 }
   0xf   :  { %p463_p7 = pnand %p462_p6, %p456_p3 }
  0x11   :  { %466 = shalt.err (!%p463_p7)
}
  0x12   :  { %s541_s9 = smov 128   ;;  %s542_s10 = smov 8  }
  0x13   :  { %44 = dma.hbm_to_vmem [thread:$0]  %s697_s4, 2176, %s39_s22, [#allocation7], %s541_s9, %s541_s9, %s542_s10  }
  0x14   :  { %s467_s15 = scalar_lea.hbm %s696_s3, 384 }
  0x15   :  { %p468_p8 = scmp.ne.s32.totalorder %s696_s3, %s467_s15  ;;  %p471_p9 = scmp.lt.u32.totalorder %s467_s15, %s696_s3 }
  0x17   :  { %p473_p10 = pnand %p471_p9, %p468_p8 }
  0x19   :  { %476 = shalt.err (!%p473_p10)
}
  0x1a   :  { %s477_s20 = scalar_lea.vmem %s583_s24, 384  ;;  %p482_p12 = scmp.lt.s32.totalorder %s583_s24, %s583_s24 }
  0x1b   :  { %p478_p11 = scmp.ne.s32.totalorder %s583_s24, %s477_s20  ;;  %p483_p13 = scmp.lt.s32.totalorder %s477_s20, %s477_s20 }
  0x1d   :  { %p484_p0 = por %p483_p13, %p482_p12 }
  0x1f   :  { %p485_p1 = pnand %p484_p0, %p478_p11 }
  0x21   :  { %488 = shalt.err (!%p485_p1)
}
  0x22   :  { %32 = dma.hbm_to_vmem [thread:$0]  %s696_s3, 384, %s583_s24, [#allocation4], %s541_s9, %s541_s9, %s542_s10  }
  0x23   :  { %s543_s22 = smov [#allocation8]   ;;  %s489_s27 = scalar_lea.hbm %s698_s5, 2176 }
  0x24   :  { %s50_s23 = sshll.u32 %s543_s22, 4  ;;  %p490_p2 = scmp.ne.s32.totalorder %s698_s5, %s489_s27  ;;  %s51_s23 = int_to_ptr.vmem [resolvable:$true] %s50_s23 }
  0x25   :  { %p493_p3 = scmp.lt.u32.totalorder %s489_s27, %s698_s5 }
  0x27   :  { %p495_p4 = pnand %p493_p3, %p490_p2 }
  0x29   :  { %498 = shalt.err (!%p495_p4)
}
  0x2a   :  { %s499_s8 = scalar_lea.vmem %s51_s23, 2176  ;;  %p504_p6 = scmp.lt.s32.totalorder %s51_s23, %s51_s23 }
  0x2b   :  { %p500_p5 = scmp.ne.s32.totalorder %s51_s23, %s499_s8  ;;  %p505_p7 = scmp.lt.s32.totalorder %s499_s8, %s499_s8 }
  0x2d   :  { %p506_p8 = por %p505_p7, %p504_p6 }
  0x2f   :  { %p507_p9 = pnand %p506_p8, %p500_p5 }
  0x31   :  { %510 = shalt.err (!%p507_p9)
}
  0x32   :  { %56 = dma.hbm_to_vmem [thread:$0]  %s698_s5, 2176, %s51_s23, [#allocation7], %s541_s9, %s541_s9, %s542_s10  }
  0x33   :  { %533 = dma.done.wait [#allocation4], 384  }
  0x34   :  { %534 = vsyncadd [#allocation4], 4294966912 }
  0x35   :  { %535 = dma.done.wait [#allocation7], 4352  }
  0x36   :  { %536 = vsyncadd [#allocation7], 4294962944  ;;  %v544_v0 = vmov 0.0|0.0   ;;  %vm545_vm0 = vmmov 0   ;;  %v546_v1 = vmov 0.0   ;;  %v640_v2 = vstv %s693_s0  ;;  %v67_v3 = vld [vmem:[#allocation3] sm:$0xff] }
  0x37   :  { %400 = vmatprep.subr.bf16.mxu0 %v544_v0  ;;  %362 = vmatprep.mubr.msk.f32.mxu0 %vm545_vm0, %v546_v1  ;;  %v68_v4 = vld [vmem:[#allocation3 + $0x8] sm:$0xff]  ;;  %v74_v5 = vld [vmem:[%s695_s2] sm:$0xff]  ;;  %vm71_vm1 = vcmp.ge.f32.partialorder %v67_v3, %v640_v2  ;;  %v194_v11 = vld [vmem:[#allocation6] sm:$0xff]  ;;  %vm85_vm6 = vcmask 130048   ;;  %v81_v49 = vlaneseq  ;;  %s547_s16 = smov [#allocation9]  }
  0x38   :  { %404 = vmatprep.subr.bf16.mxu1 %v544_v0  ;;  %397 = vmatprep.mubr.msk.f32.mxu1 %vm545_vm0, %v546_v1  ;;  %vm72_vm2 = vcmp.ge.f32.partialorder %v68_v4, %v640_v2  ;;  %v75_v6 = vld [vmem:[%s695_s2 + $0x8] sm:$0xff]  ;;  %v160_v7 = vld [vmem:[#allocation8] sm:$0xff]  ;;  %v162_v13 = vld [vmem:[#allocation8 + $0x10] sm:$0xff]  ;;  %s309_s17 = sshll.u32 %s547_s16, 4  ;;  %s310_s17 = int_to_ptr.vmem [resolvable:$true] %s309_s17 }
  0x39   :  { %v401_v8 = vpack.c.bf16 %v75_v6, %v74_v5  ;;  %vm402_vm3 = vmpackc.low %vm72_vm2, %vm71_vm1  ;;  %v80_v9 = vld [vmem:[%s694_s1] sm:$0xff]  ;;  %v161_v10 = vld [vmem:[#allocation8 + $0x8] sm:$0xff]  ;;  %vm177_vm4 = vcmp.ge.f32.partialorder %v160_v7, %v640_v2  ;;  %vm179_vm8 = vcmp.ge.f32.partialorder %v162_v13, %v640_v2  ;;  %v82_v51 = vshrl.u32 %v81_v49, 7  ;;  %p516_p11 = scmp.lt.s32.totalorder %s310_s17, %s310_s17 }
  0x3a   :  { %vm178_vm5 = vcmp.ge.f32.partialorder %v161_v10, %v640_v2  ;;  %v195_v12 = vld [vmem:[#allocation6 + $0x8] sm:$0xff]  ;;  %v163_v14 = vld [vmem:[#allocation8 + $0x18] sm:$0xff]  ;;  %v196_v16 = vld [vmem:[#allocation6 + $0x10] sm:$0xff] }
  0x3b   :  { %403 = vmatpush3.bf16.msk.msra.mxu0 %vm402_vm3, %v401_v8  ;;  %v405_v15 = vpack.c.bf16 %v195_v12, %v194_v11  ;;  %vm406_vm7 = vmpackc.low %vm178_vm5, %vm177_vm4  ;;  %vm180_vm9 = vcmp.ge.f32.partialorder %v163_v14, %v640_v2  ;;  %v197_v17 = vld [vmem:[#allocation6 + $0x18] sm:$0xff]  ;;  %v164_v18 = vld [vmem:[#allocation8 + $0x20] sm:$0xff]  ;;  %v83_v53 = vsub.s32 0, %v82_v51 }
  0x3c   :  { %v165_v19 = vld [vmem:[#allocation8 + $0x28] sm:$0xff]  ;;  %v409_v20 = vpack.c.bf16 %v197_v17, %v196_v16  ;;  %vm410_vm10 = vmpackc.low %vm180_vm9, %vm179_vm8  ;;  %v198_v21 = vld [vmem:[#allocation6 + $0x20] sm:$0xff]  ;;  %vm181_vm11 = vcmp.ge.f32.partialorder %v164_v18, %v640_v2 }
  0x3d   :  { %407 = vmatpush3.bf16.msk.msra.mxu1 %vm406_vm7, %v405_v15  ;;  %v199_v22 = vld [vmem:[#allocation6 + $0x28] sm:$0xff]  ;;  %vm182_vm12 = vcmp.ge.f32.partialorder %v165_v19, %v640_v2  ;;  %v166_v23 = vld [vmem:[#allocation8 + $0x30] sm:$0xff]  ;;  %v167_v24 = vld [vmem:[#allocation8 + $0x38] sm:$0xff] }
  0x3e   :  { %363 = vmatmul.mubr.msk.f32.vlgmr.msra.gmra.mrb[0].mxu0 %vm85_vm6, %v80_v9  ;;  %408 = vmatprep.subr.bf16.mxu1 %v544_v0  ;;  %v413_v25 = vpack.c.bf16 %v199_v22, %v198_v21  ;;  %vm414_vm13 = vmpackc.low %vm182_vm12, %vm181_vm11  ;;  %v200_v26 = vld [vmem:[#allocation6 + $0x30] sm:$0xff]  ;;  %v201_v27 = vld [vmem:[#allocation6 + $0x38] sm:$0xff]  ;;  %vm183_vm14 = vcmp.ge.f32.partialorder %v166_v23, %v640_v2  ;;  %vm184_vm15 = vcmp.ge.f32.partialorder %v167_v24, %v640_v2 }
  0x3f   :  { %v168_v28 = vld [vmem:[#allocation8 + $0x40] sm:$0xff]  ;;  %v169_v29 = vld [vmem:[#allocation8 + $0x48] sm:$0xff]  ;;  %v417_v30 = vpack.c.bf16 %v201_v27, %v200_v26  ;;  %vm418_vm0 = vmpackc.low %vm184_vm15, %vm183_vm14 }
  0x40   :  { %v202_v31 = vld [vmem:[#allocation6 + $0x40] sm:$0xff]  ;;  %v203_v32 = vld [vmem:[#allocation6 + $0x48] sm:$0xff]  ;;  %vm185_vm1 = vcmp.ge.f32.partialorder %v168_v28, %v640_v2  ;;  %vm186_vm2 = vcmp.ge.f32.partialorder %v169_v29, %v640_v2  ;;  %v170_v33 = vld [vmem:[#allocation8 + $0x50] sm:$0xff] }
  0x41   :  { %411 = vmatpush3.bf16.msk.msra.mxu1 %vm410_vm10, %v409_v20  ;;  %v171_v34 = vld [vmem:[#allocation8 + $0x58] sm:$0xff]  ;;  %v421_v35 = vpack.c.bf16 %v203_v32, %v202_v31  ;;  %vm422_vm3 = vmpackc.low %vm186_vm2, %vm185_vm1  ;;  %v204_v36 = vld [vmem:[#allocation6 + $0x50] sm:$0xff]  ;;  %vm187_vm4 = vcmp.ge.f32.partialorder %v170_v33, %v640_v2 }
  0x42   :  { %412 = vmatprep.subr.bf16.mxu1 %v544_v0  ;;  %v205_v37 = vld [vmem:[#allocation6 + $0x58] sm:$0xff]  ;;  %vm188_vm5 = vcmp.ge.f32.partialorder %v171_v34, %v640_v2  ;;  %v172_v38 = vld [vmem:[#allocation8 + $0x60] sm:$0xff]  ;;  %v173_v39 = vld [vmem:[#allocation8 + $0x68] sm:$0xff] }
  0x43   :  { %v425_v40 = vpack.c.bf16 %v205_v37, %v204_v36  ;;  %vm426_vm6 = vmpackc.low %vm188_vm5, %vm187_vm4  ;;  %v206_v41 = vld [vmem:[#allocation6 + $0x60] sm:$0xff]  ;;  %v207_v42 = vld [vmem:[#allocation6 + $0x68] sm:$0xff]  ;;  %vm189_vm7 = vcmp.ge.f32.partialorder %v172_v38, %v640_v2  ;;  %vm190_vm8 = vcmp.ge.f32.partialorder %v173_v39, %v640_v2 }
  0x44   :  { %v429_v43 = vpack.c.bf16 %v207_v42, %v206_v41  ;;  %vm430_vm9 = vmpackc.low %vm190_vm8, %vm189_vm7  ;;  %v174_v44 = vld [vmem:[#allocation8 + $0x70] sm:$0xff]  ;;  %v175_v45 = vld [vmem:[#allocation8 + $0x78] sm:$0xff] }
  0x45   :  { %415 = vmatpush3.bf16.msk.msra.mxu1 %vm414_vm13, %v413_v25  ;;  %v208_v46 = vld [vmem:[#allocation6 + $0x70] sm:$0xff]  ;;  %vm191_vm10 = vcmp.ge.f32.partialorder %v174_v44, %v640_v2  ;;  %vm192_vm11 = vcmp.ge.f32.partialorder %v175_v45, %v640_v2  ;;  %v209_v47 = vld [vmem:[#allocation6 + $0x78] sm:$0xff]  ;;  %v176_v60 = vld [vmem:[#allocation8 + $0x80] sm:$0x1] }
  0x46   :  { %416 = vmatprep.subr.bf16.mxu1 %v544_v0  ;;  %v433_v48 = vpack.c.bf16 %v209_v47, %v208_v46  ;;  %vm434_vm12 = vmpackc.low %vm192_vm11, %vm191_vm10  ;;  %v69_v50 = vld [vmem:[#allocation3 + $0x10] sm:$0x1]  ;;  %vm193_vm14 = vcmp.ge.f32.partialorder %v176_v60, %v640_v2  ;;  %v210_v61 = vld [vmem:[#allocation6 + $0x80] sm:$0x1] }
  0x47   :  { %vm73_vm13 = vcmp.ge.f32.partialorder %v69_v50, %v640_v2  ;;  %v76_v52 = vld [vmem:[%s695_s2 + $0x10] sm:$0x1]  ;;  %v227_v62 = vsel %vm193_vm14, %v210_v61, 0.0  ;;  %s511_s2 = scalar_lea.vmem %s310_s17, 128 }
  0x48   :  { %v79_v54 = vsel %vm73_vm13, %v76_v52, 0.0  ;;  %v231_v63 = vrot.slane %v227_v62, %v83_v53  ;;  %p512_p10 = scmp.ne.s32.totalorder %s310_s17, %s511_s2  ;;  %p517_p12 = scmp.lt.s32.totalorder %s511_s2, %s511_s2 }
  0x49   :  { %419 = vmatpush3.bf16.msk.msra.mxu1 %vm418_vm0, %v417_v30  ;;  %v84_v55 = vrot.slane %v79_v54, %v83_v53 }
  0x4a   :  { %420 = vmatprep.subr.bf16.mxu1 %v544_v0  ;;  %p518_p13 = por %p517_p12, %p516_p11 }
  0x4c   :  { %p519_p0 = pnand %p518_p13, %p512_p10 }
  0x4d   :  { %423 = vmatpush3.bf16.msk.msra.mxu1 %vm422_vm3, %v421_v35 }
  0x4e   :  { %424 = vmatprep.subr.bf16.mxu1 %v544_v0 }
  0x51   :  { %427 = vmatpush3.bf16.msk.msra.mxu1 %vm426_vm6, %v425_v40 }
  0x52   :  { %428 = vmatprep.subr.bf16.mxu1 %v544_v0 }
  0x55   :  { %431 = vmatpush3.bf16.msk.msra.mxu1 %vm430_vm9, %v429_v43 }
  0x56   :  { %432 = vmatprep.subr.bf16.mxu1 %v544_v0 }
  0x59   :  { %435 = vmatpush3.bf16.msk.msra.mxu1 %vm434_vm12, %v433_v48 }
 0x111   :  { %v155_v56 = vpop.f32.mrb[0].mxu0 }
 0x112   :  { %v156_v57 = vadd.f32 %v155_v56, %v84_v55  ;;  %v364_v58 = vpop.f32.mrb[1].mxu0 }
 0x114   :  { %v159_v59 = vmax.f32 %v156_v57, 0.0 }
 0x116   :  { %398 = vmatmul.mubr.f32.vlgmr.msra.gmra.mrb[0].mxu1 %v159_v59 }
 0x1e9   :  { %v298_v0 = vpop.f32.mrb[0].mxu1 }
 0x1ea   :  { %v299_v1 = vadd.f32 %v298_v0, %v231_v63  ;;  %v399_v3 = vpop.f32.mrb[1].mxu1 }
 0x1ec   :  { %302 = vst [vmem:[#allocation9] sm:$0xff] %v299_v1 }
 0x1ed   :  { %522 = shalt.err (!%p519_p0)
}
 0x1ee   :  { %s523_s20 = scalar_lea.hbm %s699_s6, 128 }
 0x1ef   :  { %p524_p1 = scmp.ne.s32.totalorder %s699_s6, %s523_s20  ;;  %p527_p2 = scmp.lt.u32.totalorder %s523_s20, %s699_s6 }
 0x1f1   :  { %p529_p3 = pnand %p527_p2, %p524_p1 }
 0x1f3   :  { %532 = shalt.err (!%p529_p3)
}
 0x1f4   :  { %312 = dma.vmem_to_hbm [thread:$0]  %s310_s17, 128, %s699_s6, [#allocation5]  }
 0x1f5   :  { %537 = dma.done.wait [#allocation5], 128  }
 0x1f6   :  { %538 = vsyncadd [#allocation5], 4294967168 }
 0x1f7   :  { %316 = vsyncpa [#allocation4], 1 }
 0x1f8   :  { %317 = vsyncpa [#allocation7], 1 }
 0x1f9   :  { %318 = vsyncpa [#allocation5], 1 }

</bundles_post_ra>
